<compile_context>
chip_gen: v7x
topology: tpu7x:2x2x1
jax: 0.10.0
libtpu: 0.0.40
codegen_flags: <defaults>
</compile_context>

<pallas_src>
import functools

import jax
import jax.numpy as jnp
from jax.experimental import pallas as pl
from jax.experimental.pallas import tpu as pltpu

HIDDEN = 256
MAX_BLOCK_B = 4096  # ~3.2 KB/row of f32/bf16 intermediates -> <= ~13 MiB scratch


def _round_up(n, m):
    return ((n + m - 1) // m) * m


def _default_epilogue_dtype():
    """bf16 bias+ReLU epilogue on chips with bf16 VALUs (v6e/v7x), f32 otherwise."""
    try:
        kind = jax.devices()[0].device_kind.lower()
    except Exception:  # pragma: no cover - device query failed; stay safe
        return jnp.float32
    if any(v in kind for v in ("v2", "v3", "v4", "v5")):
        return jnp.float32
    return jnp.bfloat16


def tdactor_kernel(x_ref, w1_ref, b1_ref, w2_ref, b2_ref, w3_ref, b3_ref, o_ref,
                   *, epilogue_dtype):
    # Layer 1: cast the streamed f32 activations to bf16 at the dot boundary,
    # accumulate in f32 on the MXU, run bias+ReLU in `epilogue_dtype`.
    x = x_ref[...].astype(jnp.bfloat16)
    h1 = jnp.dot(x, w1_ref[...], preferred_element_type=jnp.float32)
    h1 = h1.astype(epilogue_dtype) + b1_ref[...].astype(epilogue_dtype)
    h1 = jnp.maximum(h1, 0.0).astype(jnp.bfloat16)

    # Layer 2
    h2 = jnp.dot(h1, w2_ref[...], preferred_element_type=jnp.float32)
    h2 = h2.astype(epilogue_dtype) + b2_ref[...].astype(epilogue_dtype)
    h2 = jnp.maximum(h2, 0.0).astype(jnp.bfloat16)

    # Layer 3 (no activation); keep final bias add in f32.
    out = jnp.dot(h2, w3_ref[...], preferred_element_type=jnp.float32) + b3_ref[...]
    o_ref[...] = out.astype(o_ref.dtype)


def prepare_tdactor_params(params):
    """One-time prep: cast weights to bf16 (MXU-native), keep biases f32.

    Input params (all f32, already transposed to [in, out]):
      w1 [state_dim, 256], b1 [1, 256], w2 [256, 256], b2 [1, 256],
      w3 [256, action_dim], b3 [1, action_dim].
    The returned dict contains ONLY arrays (no Python ints) so it is a clean
    jit pytree; all static sizes are recovered from .shape inside the wrapper.
    """
    return {
        "w1": params["w1"].astype(jnp.bfloat16),
        "b1": params["b1"].astype(jnp.float32),
        "w2": params["w2"].astype(jnp.bfloat16),
        "b2": params["b2"].astype(jnp.float32),
        "w3": params["w3"].astype(jnp.bfloat16),
        "b3": params["b3"].astype(jnp.float32),
    }


@functools.partial(jax.jit, static_argnames=("block_b",))
def tdactor_forward(x, prepared, *, block_b=None):
    """x: [B, state_dim] float32.  prepared: output of prepare_tdactor_params."""
    B, state_dim = x.shape
    w1, b1 = prepared["w1"], prepared["b1"]
    w2, b2 = prepared["w2"], prepared["b2"]
    w3, b3 = prepared["w3"], prepared["b3"]
    assert w1.shape[0] == state_dim, "x feature dim must match w1 input dim"
    action_dim = w3.shape[1]

    # Batch tiling: single step for small batches; otherwise >=2 steps (so the
    # "parallel" axis can shard across v7x's two TensorCores), 256-row-aligned
    # tiles without degenerate 1-row tails, and a VMEM-derived upper clamp.
    if block_b is None:
        if B <= 256:
            block_b = B
        else:
            n_steps = max(2, pl.cdiv(B, 1024))
            block_b = _round_up(pl.cdiv(B, n_steps), 256)
    block_b = max(8, min(int(block_b), MAX_BLOCK_B))
    block_b = _round_up(block_b, 8)
    if block_b >= B:
        block_b = B  # full-extent block (always a legal BlockSpec)
    grid = (pl.cdiv(B, block_b),)

    # Scoped-VMEM budget: double-buffered x/out tiles + resident weights + f32/bf16
    # layer intermediates, with headroom; capped at 32 MiB (safe on v7x 64 MiB/TC).
    bytes_w = 2 * ((state_dim * HIDDEN + HIDDEN * HIDDEN + HIDDEN * action_dim) * 2
                   + (2 * HIDDEN + action_dim) * 4)
    bytes_io = 2 * block_b * state_dim * 4 + 2 * block_b * action_dim * 4
    bytes_tmp = block_b * (HIDDEN * (4 + 2) * 2 + state_dim * 2 + action_dim * 4)
    vmem_limit = min(max(bytes_w + bytes_io + bytes_tmp + (8 << 20), 16 << 20), 32 << 20)

    flops = 2 * B * (state_dim * HIDDEN + HIDDEN * HIDDEN + HIDDEN * action_dim)
    bytes_accessed = (B * state_dim * 4 + B * action_dim * 4
                      + (state_dim * HIDDEN + HIDDEN * HIDDEN + HIDDEN * action_dim) * 2
                      + (2 * HIDDEN + action_dim) * 4)

    kernel = functools.partial(tdactor_kernel, epilogue_dtype=_default_epilogue_dtype())

    return pl.pallas_call(
        kernel,
        out_shape=jax.ShapeDtypeStruct((B, action_dim), x.dtype),
        grid_spec=pltpu.PrefetchScalarGridSpec(
            num_scalar_prefetch=0,
            grid=grid,
            in_specs=[
                # batch-tiled activations (streamed, unpadded narrow last dim)
                pl.BlockSpec((block_b, state_dim), lambda i: (i, 0)),
                # weights / biases: constant block index -> VMEM-resident
                pl.BlockSpec((state_dim, HIDDEN), lambda i: (0, 0)),
                pl.BlockSpec((1, HIDDEN), lambda i: (0, 0)),
                pl.BlockSpec((HIDDEN, HIDDEN), lambda i: (0, 0)),
                pl.BlockSpec((1, HIDDEN), lambda i: (0, 0)),
                pl.BlockSpec((HIDDEN, action_dim), lambda i: (0, 0)),
                pl.BlockSpec((1, action_dim), lambda i: (0, 0)),
            ],
            out_specs=pl.BlockSpec((block_b, action_dim), lambda i: (i, 0)),
        ),
        compiler_params=pltpu.CompilerParams(
            dimension_semantics=("parallel",),
            vmem_limit_bytes=int(vmem_limit),
        ),
        cost_estimate=pl.CostEstimate(
            flops=int(flops), transcendentals=0, bytes_accessed=int(bytes_accessed)),
    )(x, w1, b1, w2, b2, w3, b3)


def init_tdactor_params(key, state_dim, action_dim):
    """Deterministic init matching nn.Linear default: U(-1/sqrt(fan_in), 1/sqrt(fan_in)).
    Weights stored already transposed to [in, out], f32 (master copy)."""
    ks = jax.random.split(key, 6)

    def linear(kw, kb, fan_in, fan_out):
        bound = 1.0 / jnp.sqrt(jnp.float32(fan_in))
        w = jax.random.uniform(kw, (fan_in, fan_out), jnp.float32, -bound, bound)
        b = jax.random.uniform(kb, (1, fan_out), jnp.float32, -bound, bound)
        return w, b

    w1, b1 = linear(ks[0], ks[1], state_dim, HIDDEN)
    w2, b2 = linear(ks[2], ks[3], HIDDEN, HIDDEN)
    w3, b3 = linear(ks[4], ks[5], HIDDEN, action_dim)
    return {"w1": w1, "b1": b1, "w2": w2, "b2": b2, "w3": w3, "b3": b3}


def tdactor_reference_f32(x, p):
    h1 = jnp.maximum(x @ p["w1"] + p["b1"], 0.0)
    h2 = jnp.maximum(h1 @ p["w2"] + p["b2"], 0.0)
    return h2 @ p["w3"] + p["b3"]


if __name__ == "__main__":
    key = jax.random.PRNGKey(0)
    k_param, k_x = jax.random.split(key)

    batch, state_dim, action_dim = 8, 4, 2
    params = init_tdactor_params(k_param, state_dim, action_dim)
    prepared = prepare_tdactor_params(params)
    x = jax.random.normal(k_x, (batch, state_dim), jnp.float32)

    out = tdactor_forward(x, prepared)
    out = jax.block_until_ready(out)

    ref = tdactor_reference_f32(x, params)
    assert out.shape == (batch, action_dim)
    assert bool(jnp.all(jnp.isfinite(out)))
    # bf16 weights/activations with f32 accumulation: expect ~1e-2 abs error
    # vs the pure-f32 reference.
    assert jnp.allclose(out, ref, atol=5e-2, rtol=5e-2), "mismatch vs JAX reference"

    print("KERNEL_OK")
</pallas_src>

<mosaic_0001>
module attributes {stable_mosaic.version = 11 : i64} {
  func.func @tdactor_kernel(%arg0: i32, %arg1: memref<8x4xf32, #tpu.memory_space<vmem>>, %arg2: memref<4x256xbf16, #tpu.memory_space<vmem>>, %arg3: memref<1x256xf32, #tpu.memory_space<vmem>>, %arg4: memref<256x256xbf16, #tpu.memory_space<vmem>>, %arg5: memref<1x256xf32, #tpu.memory_space<vmem>>, %arg6: memref<256x2xbf16, #tpu.memory_space<vmem>>, %arg7: memref<1x2xf32, #tpu.memory_space<vmem>>, %arg8: memref<8x2xf32, #tpu.memory_space<vmem>>) attributes {dimension_semantics = [#tpu.dimension_semantics<parallel>], iteration_bounds = array<i64: 1>, scalar_prefetch = 0 : i64, scratch_operands = 0 : i64, tpu.core_type = #tpu.core_type<tc>, window_params = [{transform_indices = @transform_0, window_bounds = array<i64: 8, 4>}, {pipeline_mode = #tpu.pipeline_mode<synchronous>, transform_indices = @transform_1, window_bounds = array<i64: 4, 256>}, {pipeline_mode = #tpu.pipeline_mode<synchronous>, transform_indices = @transform_2, window_bounds = array<i64: 1, 256>}, {pipeline_mode = #tpu.pipeline_mode<synchronous>, transform_indices = @transform_3, window_bounds = array<i64: 256, 256>}, {pipeline_mode = #tpu.pipeline_mode<synchronous>, transform_indices = @transform_4, window_bounds = array<i64: 1, 256>}, {pipeline_mode = #tpu.pipeline_mode<synchronous>, transform_indices = @transform_5, window_bounds = array<i64: 256, 2>}, {pipeline_mode = #tpu.pipeline_mode<synchronous>, transform_indices = @transform_6, window_bounds = array<i64: 1, 2>}, {transform_indices = @transform_7, window_bounds = array<i64: 8, 2>}]} {
    %c0 = arith.constant 0 : index
    %c0_0 = arith.constant 0 : index
    %0 = vector.load %arg1[%c0, %c0_0] : memref<8x4xf32, #tpu.memory_space<vmem>>, vector<8x4xf32>
    %1 = arith.truncf %0 : vector<8x4xf32> to vector<8x4xbf16>
    %c0_1 = arith.constant 0 : index
    %c0_2 = arith.constant 0 : index
    %2 = vector.load %arg2[%c0_1, %c0_2] : memref<4x256xbf16, #tpu.memory_space<vmem>>, vector<4x256xbf16>
    %cst = arith.constant dense<0.000000e+00> : vector<8x256xf32>
    %3 = tpu.matmul %1, %2, %cst {dimension_numbers = #tpu.dot_dimension_numbers<[1], [0], [0], [1], [0, 0, 1, 1], [], []>} : vector<8x4xbf16>, vector<4x256xbf16>, vector<8x256xf32> -> vector<8x256xf32>
    %4 = arith.truncf %3 : vector<8x256xf32> to vector<8x256xbf16>
    %c0_3 = arith.constant 0 : index
    %c0_4 = arith.constant 0 : index
    %5 = vector.load %arg3[%c0_3, %c0_4] : memref<1x256xf32, #tpu.memory_space<vmem>>, vector<1x256xf32>
    %6 = arith.truncf %5 : vector<1x256xf32> to vector<1x256xbf16>
    %7 = vector.broadcast %6 : vector<1x256xbf16> to vector<8x256xbf16>
    %8 = arith.addf %4, %7 : vector<8x256xbf16>
    %cst_5 = arith.constant 0.000000e+00 : bf16
    %9 = vector.broadcast %cst_5 : bf16 to vector<8x256xbf16>
    %10 = arith.maximumf %8, %9 : vector<8x256xbf16>
    %c0_6 = arith.constant 0 : index
    %c0_7 = arith.constant 0 : index
    %11 = vector.load %arg4[%c0_6, %c0_7] : memref<256x256xbf16, #tpu.memory_space<vmem>>, vector<256x256xbf16>
    %cst_8 = arith.constant dense<0.000000e+00> : vector<8x256xf32>
    %12 = tpu.matmul %10, %11, %cst_8 {dimension_numbers = #tpu.dot_dimension_numbers<[1], [0], [0], [1], [0, 0, 1, 1], [], []>} : vector<8x256xbf16>, vector<256x256xbf16>, vector<8x256xf32> -> vector<8x256xf32>
    %13 = arith.truncf %12 : vector<8x256xf32> to vector<8x256xbf16>
    %c0_9 = arith.constant 0 : index
    %c0_10 = arith.constant 0 : index
    %14 = vector.load %arg5[%c0_9, %c0_10] : memref<1x256xf32, #tpu.memory_space<vmem>>, vector<1x256xf32>
    %15 = arith.truncf %14 : vector<1x256xf32> to vector<1x256xbf16>
    %16 = vector.broadcast %15 : vector<1x256xbf16> to vector<8x256xbf16>
    %17 = arith.addf %13, %16 : vector<8x256xbf16>
    %cst_11 = arith.constant 0.000000e+00 : bf16
    %18 = vector.broadcast %cst_11 : bf16 to vector<8x256xbf16>
    %19 = arith.maximumf %17, %18 : vector<8x256xbf16>
    %c0_12 = arith.constant 0 : index
    %c0_13 = arith.constant 0 : index
    %20 = vector.load %arg6[%c0_12, %c0_13] : memref<256x2xbf16, #tpu.memory_space<vmem>>, vector<256x2xbf16>
    %cst_14 = arith.constant dense<0.000000e+00> : vector<8x2xf32>
    %21 = tpu.matmul %19, %20, %cst_14 {dimension_numbers = #tpu.dot_dimension_numbers<[1], [0], [0], [1], [0, 0, 1, 1], [], []>} : vector<8x256xbf16>, vector<256x2xbf16>, vector<8x2xf32> -> vector<8x2xf32>
    %c0_15 = arith.constant 0 : index
    %c0_16 = arith.constant 0 : index
    %22 = vector.load %arg7[%c0_15, %c0_16] : memref<1x2xf32, #tpu.memory_space<vmem>>, vector<1x2xf32>
    %23 = vector.broadcast %22 : vector<1x2xf32> to vector<8x2xf32>
    %24 = arith.addf %21, %23 : vector<8x2xf32>
    %c0_17 = arith.constant 0 : index
    %c0_18 = arith.constant 0 : index
    %25 = vector.load %arg8[%c0_17, %c0_18] : memref<8x2xf32, #tpu.memory_space<vmem>>, vector<8x2xf32>
    tpu.vector_store %arg8[%c0_17, %c0_18], %24 {strides = array<i32>} : memref<8x2xf32, #tpu.memory_space<vmem>>, vector<8x2xf32>,
    return
  }
  func.func @transform_0(%arg0: i32) -> (i32, i32) {
    %c0_i32 = arith.constant 0 : i32
    %c0_i32_0 = arith.constant 0 : i32
    return %arg0, %c0_i32 : i32, i32
  }
  func.func @transform_1(%arg0: i32) -> (i32, i32) {
    %c0_i32 = arith.constant 0 : i32
    %c0_i32_0 = arith.constant 0 : i32
    %c0_i32_1 = arith.constant 0 : i32
    return %c0_i32, %c0_i32_0 : i32, i32
  }
  func.func @transform_2(%arg0: i32) -> (i32, i32) {
    %c0_i32 = arith.constant 0 : i32
    %c0_i32_0 = arith.constant 0 : i32
    %c0_i32_1 = arith.constant 0 : i32
    return %c0_i32, %c0_i32_0 : i32, i32
  }
  func.func @transform_3(%arg0: i32) -> (i32, i32) {
    %c0_i32 = arith.constant 0 : i32
    %c0_i32_0 = arith.constant 0 : i32
    %c0_i32_1 = arith.constant 0 : i32
    return %c0_i32, %c0_i32_0 : i32, i32
  }
  func.func @transform_4(%arg0: i32) -> (i32, i32) {
    %c0_i32 = arith.constant 0 : i32
    %c0_i32_0 = arith.constant 0 : i32
    %c0_i32_1 = arith.constant 0 : i32
    return %c0_i32, %c0_i32_0 : i32, i32
  }
  func.func @transform_5(%arg0: i32) -> (i32, i32) {
    %c0_i32 = arith.constant 0 : i32
    %c0_i32_0 = arith.constant 0 : i32
    %c0_i32_1 = arith.constant 0 : i32
    return %c0_i32, %c0_i32_0 : i32, i32
  }
  func.func @transform_6(%arg0: i32) -> (i32, i32) {
    %c0_i32 = arith.constant 0 : i32
    %c0_i32_0 = arith.constant 0 : i32
    %c0_i32_1 = arith.constant 0 : i32
    return %c0_i32, %c0_i32_0 : i32, i32
  }
  func.func @transform_7(%arg0: i32) -> (i32, i32) {
    %c0_i32 = arith.constant 0 : i32
    %c0_i32_0 = arith.constant 0 : i32
    return %arg0, %c0_i32 : i32, i32
  }
}

</mosaic_0001>

<bundles_post_ra>
// kernel: tdactor_forward.1
= control target key start
LH: loop header
LB: loop body
LE: loop exit
PB: predicated region body
PF: predicated region fallthrough
CT: control target
= control target key end

     0   :  { %12 = vsyncpa [#allocation3], 0  ;;  %s754_s24 = smov [#allocation2]   ;;  %s881_s0 = inlined_call_operand.vmem [shape: f32[8,4], index: 0, kind: input, shape index: {}]   ;;  %s882_s1 = inlined_call_operand.vmem [shape: bf16[4,256], index: 1, kind: input, shape index: {}]   ;;  %s883_s2 = inlined_call_operand.vmem [shape: f32[1,256], index: 2, kind: input, shape index: {}]   ;;  %s884_s3 = inlined_call_operand.hbm [shape: bf16[256,256], index: 3, kind: input, shape index: {}]   ;;  %s885_s4 = inlined_call_operand.vmem [shape: f32[1,256], index: 4, kind: input, shape index: {}]   ;;  %s886_s5 = inlined_call_operand.vmem [shape: bf16[256,2], index: 5, kind: input, shape index: {}]   ;;  %s887_s6 = inlined_call_operand.vmem [shape: f32[1,2], index: 6, kind: input, shape index: {}]   ;;  %s888_s7 = inlined_call_operand.vmem [shape: f32[8,2], index: 7, kind: output, shape index: {}]  }
   0x1   :  { %s24_s25 = sshll.u32 %s754_s24, 4  ;;  %s730_s28 = scalar_lea.hbm %s884_s3, 4096  ;;  %s25_s25 = int_to_ptr.vmem [resolvable:$true] %s24_s25 }
   0x2   :  { %p731_p0 = scmp.ne.s32.totalorder %s884_s3, %s730_s28  ;;  %p734_p1 = scmp.lt.u32.totalorder %s730_s28, %s884_s3 }
   0x4   :  { %p736_p2 = pnand %p734_p1, %p731_p0 }
   0x6   :  { %739 = shalt.err (!%p736_p2)
}
   0x7   :  { %s740_s10 = scalar_lea.vmem %s25_s25, 4096  ;;  %p745_p4 = scmp.lt.s32.totalorder %s25_s25, %s25_s25 }
   0x8   :  { %p741_p3 = scmp.ne.s32.totalorder %s25_s25, %s740_s10  ;;  %p746_p5 = scmp.lt.s32.totalorder %s740_s10, %s740_s10 }
   0xa   :  { %p747_p6 = por %p746_p5, %p745_p4 }
   0xc   :  { %p748_p7 = pnand %p747_p6, %p741_p3 }
   0xe   :  { %751 = shalt.err (!%p748_p7)
}
   0xf   :  { %s755_s11 = smov 128   ;;  %s756_s12 = smov 8  }
  0x10   :  { %30 = dma.hbm_to_vmem [thread:$0]  %s884_s3, 4096, %s25_s25, [#allocation3], %s755_s11, %s755_s11, %s756_s12  }
  0x11   :  { %752 = dma.done.wait [#allocation3], 4096  }
  0x12   :  { %753 = vsyncadd [#allocation3], 4294963200  ;;  %v757_v0 = vmov 0   ;;  %vm57_vm0 = vcmask 1041408   ;;  %v41_v2 = vld [vmem:[%s881_s0] sm:$0xff]  ;;  %vm53_vm1 = vcmask 31744   ;;  %v109_v50 = vlaneseq }
  0x13   :  { %96 = vmatprep.mubr.bf16.mxu0 %v757_v0  ;;  %v588_v1 = vld.sshfl [vmem:[%s882_s1] sm:$0x33 pattern:$0x76325410]  ;;  %v666_v5 = vld [vmem:[#allocation2 + $0x4] ss:$8 sps:$4 sm:$0xff]   ;;  %v42_v8 = vpack.c.bf16 %v41_v2, %v41_v2 }
  0x14   :  { %v52_v3 = vcombine.high %v588_v1, %v588_v1  ;;  %v59_v4 = vsel %vm57_vm0, %v588_v1, 0  ;;  %v668_v6 = vld [vmem:[#allocation2] ss:$8 sps:$4 sm:$0xff]   ;;  %v669_v7 = vld [vmem:[#allocation2 + $0x14] ss:$8 sps:$4 sm:$0xff]   ;;  %331 = vmatprep.subr.bf16.mxu1 %v666_v5  ;;  %v110_v51 = vshrl.u32 %v109_v50, 7 }
  0x15   :  { %332 = vmatpush1.bf16.msra.mxu1 %v668_v6  ;;  %v671_v9 = vld [vmem:[#allocation2 + $0x10] ss:$8 sps:$4 sm:$0xff]   ;;  %v672_v10 = vld [vmem:[#allocation2 + $0x24] ss:$8 sps:$4 sm:$0xff]   ;;  %v674_v11 = vld [vmem:[#allocation2 + $0x20] ss:$8 sps:$4 sm:$0xff]  }
  0x16   :  { %589 = vmatprep.subr.msk.bf16.mxu0 %vm57_vm0, %v52_v3  ;;  %333 = vmatprep.subr.bf16.mxu1 %v669_v7  ;;  %v675_v12 = vld [vmem:[#allocation2 + $0x34] ss:$8 sps:$4 sm:$0xff]   ;;  %v677_v13 = vld [vmem:[#allocation2 + $0x30] ss:$8 sps:$4 sm:$0xff]   ;;  %v678_v14 = vld [vmem:[#allocation2 + $0x44] ss:$8 sps:$4 sm:$0xff]  }
  0x17   :  { %65 = vmatpush1.bf16.msra.mxu0 %v59_v4  ;;  %v680_v15 = vld [vmem:[#allocation2 + $0x40] ss:$8 sps:$4 sm:$0xff]   ;;  %v681_v16 = vld [vmem:[#allocation2 + $0x54] ss:$8 sps:$4 sm:$0xff]   ;;  %v683_v17 = vld [vmem:[#allocation2 + $0x50] ss:$8 sps:$4 sm:$0xff]  }
  0x18   :  { %v684_v18 = vld [vmem:[#allocation2 + $0x64] ss:$8 sps:$4 sm:$0xff]   ;;  %v686_v19 = vld [vmem:[#allocation2 + $0x60] ss:$8 sps:$4 sm:$0xff]   ;;  %v687_v20 = vld [vmem:[#allocation2 + $0x74] ss:$8 sps:$4 sm:$0xff]  }
  0x19   :  { %334 = vmatpush1.bf16.msra.mxu1 %v671_v9  ;;  %v689_v21 = vld [vmem:[#allocation2 + $0x70] ss:$8 sps:$4 sm:$0xff]   ;;  %v690_v22 = vld [vmem:[#allocation2 + $0x84] ss:$8 sps:$4 sm:$0xff]   ;;  %v692_v23 = vld [vmem:[#allocation2 + $0x80] ss:$8 sps:$4 sm:$0xff]  }
  0x1a   :  { %590 = vmatmul.mubr.msk.bf16.vlgmr.msra.gmra.mrb[0].mxu0 %vm53_vm1, %v42_v8  ;;  %335 = vmatprep.subr.bf16.mxu1 %v672_v10  ;;  %v693_v24 = vld [vmem:[#allocation2 + $0x94] ss:$8 sps:$4 sm:$0xff]   ;;  %v695_v25 = vld [vmem:[#allocation2 + $0x90] ss:$8 sps:$4 sm:$0xff]   ;;  %v696_v26 = vld [vmem:[#allocation2 + $0xa4] ss:$8 sps:$4 sm:$0xff]  }
  0x1b   :  { %v698_v27 = vld [vmem:[#allocation2 + $0xa0] ss:$8 sps:$4 sm:$0xff]   ;;  %v699_v28 = vld [vmem:[#allocation2 + $0xb4] ss:$8 sps:$4 sm:$0xff]   ;;  %v701_v29 = vld [vmem:[#allocation2 + $0xb0] ss:$8 sps:$4 sm:$0xff]  }
  0x1c   :  { %v702_v30 = vld [vmem:[#allocation2 + $0xc4] ss:$8 sps:$4 sm:$0xff]   ;;  %v704_v31 = vld [vmem:[#allocation2 + $0xc0] ss:$8 sps:$4 sm:$0xff]   ;;  %v705_v32 = vld [vmem:[#allocation2 + $0xd4] ss:$8 sps:$4 sm:$0xff]  }
  0x1d   :  { %336 = vmatpush1.bf16.msra.mxu1 %v674_v11  ;;  %v707_v33 = vld [vmem:[#allocation2 + $0xd0] ss:$8 sps:$4 sm:$0xff]   ;;  %v708_v34 = vld [vmem:[#allocation2 + $0xe4] ss:$8 sps:$4 sm:$0xff]   ;;  %v710_v35 = vld [vmem:[#allocation2 + $0xe0] ss:$8 sps:$4 sm:$0xff]  }
  0x1e   :  { %337 = vmatprep.subr.bf16.mxu1 %v675_v12  ;;  %v711_v36 = vld [vmem:[#allocation2 + $0xf4] ss:$8 sps:$4 sm:$0xff]   ;;  %v713_v37 = vld [vmem:[#allocation2 + $0xf0] ss:$8 sps:$4 sm:$0xff]   ;;  %v714_v38 = vld [vmem:[%s886_s5 + $0x40] sm:$0xff]   ;;  %v111_v52 = vsub.s32 0, %v110_v51 }
  0x1f   :  { %v715_v39 = vld [vmem:[%s886_s5] sm:$0xff]   ;;  %v716_v40 = vld [vmem:[%s886_s5 + $0x48] sm:$0xff]   ;;  %640 = vmatprep.subr.bf16.mxu0 %v714_v38  ;;  %v718_v42 = vld [vmem:[%s886_s5 + $0x50] sm:$0xff]   ;;  %v115_v54 = vsub.s32 1, %v110_v51  ;;  %vm581_vm2 = vcmask 15360  }
  0x20   :  { %641 = vmatpush3.bf16.msra.mxu0 %v715_v39  ;;  %v717_v41 = vld [vmem:[%s886_s5 + $0x8] sm:$0xff]   ;;  %v719_v43 = vld [vmem:[%s886_s5 + $0x10] sm:$0xff]   ;;  %v720_v44 = vld [vmem:[%s886_s5 + $0x58] sm:$0xff]  }
  0x21   :  { %338 = vmatpush1.bf16.msra.mxu1 %v677_v13  ;;  %642 = vmatprep.subr.bf16.mxu0 %v716_v40  ;;  %v721_v45 = vld [vmem:[%s886_s5 + $0x18] sm:$0xff]   ;;  %v722_v46 = vld [vmem:[%s886_s5 + $0x60] sm:$0xff]   ;;  %v724_v48 = vld [vmem:[%s886_s5 + $0x68] sm:$0xff]  }
  0x22   :  { %339 = vmatprep.subr.bf16.mxu1 %v678_v14  ;;  %v723_v47 = vld [vmem:[%s886_s5 + $0x20] sm:$0xff]   ;;  %v725_v49 = vld [vmem:[%s886_s5 + $0x28] sm:$0xff]   ;;  %v726_v10 = vld [vmem:[%s886_s5 + $0x70] sm:$0xff]  }
  0x23   :  { %v107_v53 = vld [vmem:[%s883_s2] sm:$0x3]  ;;  %v727_v11 = vld [vmem:[%s886_s5 + $0x30] sm:$0xff]   ;;  %v728_v12 = vld [vmem:[%s886_s5 + $0x78] sm:$0xff]  }
  0x24   :  { %643 = vmatpush3.bf16.msra.mxu0 %v717_v41  ;;  %v112_v55 = vrot.slane %v107_v53, %v111_v52  ;;  %v116_v56 = vrot.slane %v107_v53, %v115_v54  ;;  %v729_v13 = vld [vmem:[%s886_s5 + $0x38] sm:$0xff]   ;;  %v374_v14 = vld [vmem:[%s885_s4] sm:$0x3] }
  0x25   :  { %340 = vmatpush1.bf16.msra.mxu1 %v680_v15  ;;  %644 = vmatprep.subr.bf16.mxu0 %v718_v42  ;;  %v379_v15 = vrot.slane %v374_v14, %v111_v52 }
  0x26   :  { %341 = vmatprep.subr.bf16.mxu1 %v681_v16  ;;  %v119_v57 = vpack.c.bf16 %v112_v55, %v112_v55  ;;  %v120_v58 = vpack.c.bf16 %v116_v56, %v116_v56  ;;  %v383_v16 = vrot.slane %v374_v14, %v115_v54 }
  0x28   :  { %645 = vmatpush3.bf16.msra.mxu0 %v719_v43  ;;  %v122_v59 = vpack.i.b16 %v119_v57, %v119_v57  ;;  %v129_v60 = vpack.i.b16 %v120_v58, %v120_v58 }
  0x29   :  { %342 = vmatpush1.bf16.msra.mxu1 %v683_v17  ;;  %646 = vmatprep.subr.bf16.mxu0 %v720_v44  ;;  %v386_v17 = vpack.c.bf16 %v379_v15, %v379_v15 }
  0x2a   :  { %343 = vmatprep.subr.bf16.mxu1 %v684_v18  ;;  %v127_v61 = vrot.slane %v122_v59, %v111_v52  ;;  %v134_v63 = vrot.slane %v129_v60, %v111_v52  ;;  %v387_v18 = vpack.c.bf16 %v383_v16, %v383_v16 }
  0x2c   :  { %647 = vmatpush3.bf16.msra.mxu0 %v721_v45 }
  0x2d   :  { %344 = vmatpush1.bf16.msra.mxu1 %v686_v19  ;;  %648 = vmatprep.subr.bf16.mxu0 %v722_v46  ;;  %v389_v19 = vpack.i.b16 %v386_v17, %v386_v17 }
  0x2e   :  { %345 = vmatprep.subr.bf16.mxu1 %v687_v20  ;;  %v396_v20 = vpack.i.b16 %v387_v18, %v387_v18 }
  0x30   :  { %649 = vmatpush3.bf16.msra.mxu0 %v723_v47 }
  0x31   :  { %346 = vmatpush1.bf16.msra.mxu1 %v689_v21  ;;  %650 = vmatprep.subr.bf16.mxu0 %v724_v48  ;;  %v394_v21 = vrot.slane %v389_v19, %v111_v52 }
  0x32   :  { %347 = vmatprep.subr.bf16.mxu1 %v690_v22 }
  0x34   :  { %651 = vmatpush3.bf16.msra.mxu0 %v725_v49 }
  0x35   :  { %348 = vmatpush1.bf16.msra.mxu1 %v692_v23  ;;  %652 = vmatprep.subr.bf16.mxu0 %v726_v10  ;;  %v401_v23 = vrot.slane %v396_v20, %v111_v52 }
  0x36   :  { %349 = vmatprep.subr.bf16.mxu1 %v693_v24 }
  0x38   :  { %653 = vmatpush3.bf16.msra.mxu0 %v727_v11 }
  0x39   :  { %350 = vmatpush1.bf16.msra.mxu1 %v695_v25  ;;  %654 = vmatprep.subr.bf16.mxu0 %v728_v12 }
  0x3a   :  { %351 = vmatprep.subr.bf16.mxu1 %v696_v26 }
  0x3c   :  { %655 = vmatpush3.bf16.msra.mxu0 %v729_v13 }
  0x3d   :  { %352 = vmatpush1.bf16.msra.mxu1 %v698_v27 }
  0x3e   :  { %353 = vmatprep.subr.bf16.mxu1 %v699_v28 }
  0x41   :  { %354 = vmatpush1.bf16.msra.mxu1 %v701_v29 }
  0x42   :  { %355 = vmatprep.subr.bf16.mxu1 %v702_v30 }
  0x45   :  { %356 = vmatpush1.bf16.msra.mxu1 %v704_v31 }
  0x46   :  { %357 = vmatprep.subr.bf16.mxu1 %v705_v32 }
  0x49   :  { %358 = vmatpush1.bf16.msra.mxu1 %v707_v33 }
  0x4a   :  { %359 = vmatprep.subr.bf16.mxu1 %v708_v34  ;;  %v623_v34 = vld [vmem:[%s887_s6] ss:$0 sm:$0xff] }
  0x4d   :  { %360 = vmatpush1.bf16.msra.mxu1 %v710_v35 }
  0x4e   :  { %361 = vmatprep.subr.bf16.mxu1 %v711_v36 }
  0x51   :  { %362 = vmatpush1.bf16.msra.mxu1 %v713_v37 }
  0xed   :  { %v98_v62 = vpop.f32.mrb[0].mxu0 }
  0xee   :  { %v105_v1 = vpack.c.bf16 %v98_v62, %v98_v62  ;;  %v100_v2 = vpop.f32.mrb[1].mxu0 }
  0xef   :  { %v106_v3 = vpack.c.bf16 %v100_v2, %v100_v2  ;;  %v102_v4 = vpop.f32.mrb[2].mxu0 }
  0xf0   :  { %v135_v5 = vadd.bf16 %v127_v61, %v105_v1  ;;  %v103_v6 = vpop.f32.mrb[3].mxu0 }
  0xf1   :  { %v136_v7 = vadd.bf16 %v134_v63, %v106_v3 }
  0xf2   :  { %v137_v9 = vmax.bf16 %v757_v0, %v135_v5 }
  0xf3   :  { %v138_v8 = vmax.bf16 %v757_v0, %v136_v7 }
  0xf5   :  { %363 = vmatprep.mubr.bf16.mxu1 %v138_v8 }
  0xf6   :  { %364 = vmatmul.mubr.bf16.vlgmr.msra.gmra.mrb[0].mxu1 %v137_v9 }
 0x1c9   :  { %v365_v22 = vpop.f32.mrb[0].mxu1 }
 0x1ca   :  { %v372_v24 = vpack.c.bf16 %v365_v22, %v365_v22  ;;  %v367_v25 = vpop.f32.mrb[1].mxu1 }
 0x1cb   :  { %v373_v26 = vpack.c.bf16 %v367_v25, %v367_v25  ;;  %v369_v27 = vpop.f32.mrb[2].mxu1 }
 0x1cc   :  { %v402_v28 = vadd.bf16 %v394_v21, %v372_v24  ;;  %v370_v29 = vpop.f32.mrb[3].mxu1 }
 0x1cd   :  { %v403_v30 = vadd.bf16 %v401_v23, %v373_v26 }
 0x1ce   :  { %v404_v32 = vmax.bf16 %v757_v0, %v402_v28 }
 0x1cf   :  { %v405_v31 = vmax.bf16 %v757_v0, %v403_v30 }
 0x1d1   :  { %573 = vmatprep.mubr.bf16.mxu0 %v405_v31 }
 0x1d2   :  { %574 = vmatmul.mubr.bf16.vlgmr.msra.gmra.mrb[4].mxu0 %v404_v32 }
 0x2a5   :  { %v656_v33 = vpop.f32.mrb[4].mxu0 }
 0x2a6   :  { %v657_v35 = vpop.f32.mrb[5].mxu0 }
 0x2a7   :  { %v658_v36 = vadd.f32 %v657_v35, %v656_v33  ;;  %v659_v37 = vpop.f32.mrb[6].mxu0 }
 0x2a8   :  { %v660_v38 = vpop.f32.mrb[7].mxu0 }
 0x2a9   :  { %v576_v39 = vadd.f32 %v658_v36, %v623_v34 }
 0x2ab   :  { %582 = vst.msk [vmem:[%s888_s7] sm:$0xff] %vm581_vm2, %v576_v39 }
 0x2ac   :  { %587 = vsyncpa [#allocation3], 1 }

</bundles_post_ra>
